<compile_context>
chip_gen: v6e
topology: v6e:2x2x1
jax: 0.10.0
libtpu: 0.0.40
codegen_flags: <defaults>
</compile_context>

<pallas_src>
import functools
import math

import jax
import jax.numpy as jnp
from jax.experimental import pallas as pl
from jax.experimental.pallas import tpu as pltpu


# ------------------------- backward Pallas kernel -------------------------

_BUFFER_BYTES = 4 * 1024 * 1024        # per-buffer VMEM budget (constant in bytes)
_VMEM_LIMIT_BYTES = 48 * 1024 * 1024   # safe on v5e/v6e (128 MiB phys) and v7x (64 MiB)


def _scale_kernel(w_ref, g_ref, o_ref):
    # w_ref: (1,) f32 scalar in SMEM; g_ref/o_ref: (tile_rows, lane) VMEM tiles.
    w = w_ref[0]
    o_ref[...] = (g_ref[...].astype(jnp.float32) * w).astype(o_ref.dtype)


def _scale_pallas(g, weight):
    """Compute weight * g via a tiled, lane-dense Pallas kernel."""
    orig_shape = g.shape
    n = math.prod(orig_shape) if orig_shape else 1
    if n == 0:
        return g

    # Pick a lane-dense width (multiple of 128) that divides numel.
    lane = next((c for c in (1024, 512, 256, 128) if n % c == 0), None)
    if lane is None:
        # Non-128-divisible numel: a padded Pallas pass would move ~3x the
        # bytes; a fused XLA elementwise multiply is already at the roofline.
        return (g * jnp.asarray(weight, dtype=jnp.float32)).astype(g.dtype)

    itemsize = jnp.dtype(g.dtype).itemsize
    m = n // lane
    g2 = g.reshape(m, lane)

    if m <= 8:
        # Tiny tensor: single full-extent block (block rows == array rows).
        tile_rows = m
    else:
        # Byte-budgeted tile (multiple of 8 sublanes), and guarantee >= 2
        # grid steps so the v7x megacore can shard the parallel axis.
        rows_budget = max(8, (_BUFFER_BYTES // (lane * itemsize)) // 8 * 8)
        half_rows = ((((m + 1) // 2) + 7) // 8) * 8
        tile_rows = min(rows_budget, half_rows)

    grid = (pl.cdiv(m, tile_rows),)
    w = jnp.asarray([weight], dtype=jnp.float32)

    out2 = pl.pallas_call(
        _scale_kernel,
        out_shape=jax.ShapeDtypeStruct((m, lane), g2.dtype),
        grid=grid,
        in_specs=[
            pl.BlockSpec(memory_space=pltpu.MemorySpace.SMEM),      # weight scalar
            pl.BlockSpec((tile_rows, lane), lambda i: (i, 0)),      # cotangent tile
        ],
        out_specs=pl.BlockSpec((tile_rows, lane), lambda i: (i, 0)),
        input_output_aliases={1: 0},  # donate the cotangent buffer
        compiler_params=pltpu.CompilerParams(
            dimension_semantics=("parallel",),
            vmem_limit_bytes=_VMEM_LIMIT_BYTES,
        ),
        cost_estimate=pl.CostEstimate(
            flops=n, transcendentals=0, bytes_accessed=2 * n * itemsize),
    )(w, g2)

    return out2.reshape(orig_shape)


# ------------------------- custom_vjp wrapper -------------------------

@functools.partial(jax.custom_vjp, nondiff_argnums=(1,))
def gradient_scalar(x, weight):
    # Forward is identity (PyTorch: input.view_as(input)) — no kernel needed.
    return x


def _gradient_scalar_fwd(x, weight):
    return x, None


def _gradient_scalar_bwd(weight, _res, g):
    return (_scale_pallas(g, weight),)


gradient_scalar.defvjp(_gradient_scalar_fwd, _gradient_scalar_bwd)


class GradientScalarLayer:
    """JAX/Pallas port of twophase GradientScalarLayer."""

    def __init__(self, weight):
        self.weight = float(weight)

    def __call__(self, x):
        return gradient_scalar(x, self.weight)

    def __repr__(self):
        return f"{self.__class__.__name__}(weight={self.weight})"


# ------------------------- demo / self-test -------------------------

if __name__ == "__main__":
    key = jax.random.PRNGKey(0)
    # NCHW feature map: batch=2, channels=4, spatial=16x16.
    x = jax.random.normal(key, (2, 4, 16, 16), dtype=jnp.float32)

    layer = GradientScalarLayer(weight=-0.1)  # typical gradient-reversal weight

    # Forward: identity (no copy, no kernel).
    y = jax.block_until_ready(layer(x))
    assert y.shape == x.shape and y.dtype == x.dtype
    assert jnp.array_equal(y, x), "forward must be identity"

    # Backward: cotangent 2.0 everywhere -> grad = 2.0 * weight.
    def loss(inp):
        return jnp.sum(layer(inp) * 2.0)

    g = jax.block_until_ready(jax.grad(loss)(x))
    expected = jnp.full_like(x, 2.0 * layer.weight)
    assert jnp.allclose(g, expected, atol=1e-6), "backward must scale grad by weight"

    # Multi-tile grid path (m=64 rows -> 2 grid steps), run under jit.
    x_big = jax.random.normal(jax.random.PRNGKey(1), (4, 16, 32, 32), dtype=jnp.float32)

    def loss_big(inp):
        return jnp.sum(layer(inp) * inp)

    g_big = jax.block_until_ready(jax.jit(jax.grad(loss_big))(x_big))
    # GRL path contributes weight*x, direct path contributes x.
    expected_big = (1.0 + layer.weight) * x_big
    assert jnp.allclose(g_big, expected_big, atol=1e-5), "multi-tile backward mismatch"

    # bf16 cotangent path (f32 compute inside the kernel, cast back).
    x_bf16 = jax.random.normal(jax.random.PRNGKey(2), (2, 8, 128), dtype=jnp.bfloat16)

    def loss_bf16(inp):
        return jnp.sum(layer(inp).astype(jnp.float32))

    g_bf16 = jax.block_until_ready(jax.grad(loss_bf16)(x_bf16))
    expected_bf16 = jnp.full_like(x_bf16, layer.weight)
    assert jnp.allclose(g_bf16.astype(jnp.float32),
                        expected_bf16.astype(jnp.float32),
                        atol=1e-2), "bf16 backward mismatch"

    # Non-128-divisible numel -> plain XLA multiply fallback.
    x_odd = jax.random.normal(jax.random.PRNGKey(3), (3, 5, 7), dtype=jnp.float32)

    def loss_odd(inp):
        return jnp.sum(layer(inp) * 3.0)

    g_odd = jax.block_until_ready(jax.grad(loss_odd)(x_odd))
    expected_odd = jnp.full_like(x_odd, 3.0 * layer.weight)
    assert jnp.allclose(g_odd, expected_odd, atol=1e-6), "odd-shape backward mismatch"

    print("KERNEL_OK")
</pallas_src>

<mosaic_0001>
module attributes {stable_mosaic.version = 11 : i64} {
  func.func @_scale_kernel(%arg0: i32, %arg1: memref<1xf32, #tpu.memory_space<smem>>, %arg2: memref<2x1024xf32, #tpu.memory_space<vmem>>, %arg3: memref<2x1024xf32, #tpu.memory_space<vmem>>) attributes {dimension_semantics = [#tpu.dimension_semantics<parallel>], iteration_bounds = array<i64: 1>, scalar_prefetch = 0 : i64, scratch_operands = 0 : i64, tpu.core_type = #tpu.core_type<tc>, window_params = [{transform_indices = @transform_0, window_bounds = array<i64: 1>}, {transform_indices = @transform_1, window_bounds = array<i64: 2, 1024>}, {transform_indices = @transform_2, window_bounds = array<i64: 2, 1024>}]} {
    %c0 = arith.constant 0 : index
    %0 = memref.load %arg1[%c0] : memref<1xf32, #tpu.memory_space<smem>>
    %c0_0 = arith.constant 0 : index
    %c0_1 = arith.constant 0 : index
    %1 = vector.load %arg2[%c0_0, %c0_1] : memref<2x1024xf32, #tpu.memory_space<vmem>>, vector<2x1024xf32>
    %2 = vector.broadcast %0 : f32 to vector<2x1024xf32>
    %3 = arith.mulf %1, %2 : vector<2x1024xf32>
    %c0_2 = arith.constant 0 : index
    %c0_3 = arith.constant 0 : index
    %4 = vector.load %arg3[%c0_2, %c0_3] : memref<2x1024xf32, #tpu.memory_space<vmem>>, vector<2x1024xf32>
    tpu.vector_store %arg3[%c0_2, %c0_3], %3 {strides = array<i32>} : memref<2x1024xf32, #tpu.memory_space<vmem>>, vector<2x1024xf32>,
    return
  }
  func.func @transform_0(%arg0: i32) -> i32 {
    %c0_i32 = arith.constant 0 : i32
    %c0_i32_0 = arith.constant 0 : i32
    return %c0_i32 : i32
  }
  func.func @transform_1(%arg0: i32) -> (i32, i32) {
    %c0_i32 = arith.constant 0 : i32
    %c0_i32_0 = arith.constant 0 : i32
    return %arg0, %c0_i32 : i32, i32
  }
  func.func @transform_2(%arg0: i32) -> (i32, i32) {
    %c0_i32 = arith.constant 0 : i32
    %c0_i32_0 = arith.constant 0 : i32
    return %arg0, %c0_i32 : i32, i32
  }
}

</mosaic_0001>

<bundles_post_ra>
// kernel: tpu_custom_call.1
= control target key start
LH: loop header
LB: loop body
LE: loop exit
PB: predicated region body
PF: predicated region fallthrough
CT: control target
= control target key end

     0   :  { %8 = vsyncpa [#allocation4], 0  ;;  %s120_s0 = inlined_call_operand.<no memory space> [shape: f32[1], index: 0, kind: input, shape index: {}]   ;;  %s121_s1 = inlined_call_operand.hbm [shape: f32[2,1024], index: 1, kind: input, shape index: {}, may-alias: {1,2}]   ;;  %s122_s2 = inlined_call_operand.hbm [shape: f32[2,1024], index: 2, kind: output, shape index: {}, may-alias: {1,2}]  }
   0x1   :  { %9 = vsyncpa [#allocation5], 0  ;;  %s94_s9 = smov [#allocation3]  }
   0x2   :  { %s18_s10 = sshll.u32 %s94_s9, 4  ;;  %s19_s10 = int_to_ptr.vmem [resolvable:$true] %s18_s10 }
   0x3   :  { %s58_s11 = scalar_lea.vmem %s19_s10, 256  ;;  %p63_p1 = scmp.lt.s32.totalorder %s19_s10, %s19_s10 }
   0x4   :  { %p59_p0 = scmp.ne.s32.totalorder %s19_s10, %s58_s11  ;;  %p64_p2 = scmp.lt.s32.totalorder %s58_s11, %s58_s11 }
   0x6   :  { %p65_p3 = por %p64_p2, %p63_p1 }
   0x8   :  { %p66_p4 = pnand %p65_p3, %p59_p0 }
   0xa   :  { %69 = shalt.err (!%p66_p4)
}
   0xb   :  { %21 = dma.hbm_to_vmem [thread:$0]  %s121_s1, 256, %s19_s10, [#allocation4]  }
   0xc   :  { %90 = dma.done.wait [#allocation4], 256  }
   0xd   :  { %91 = vsyncadd [#allocation4], 4294967040  ;;  %v28_v0 = vstv %s120_s0  ;;  %s95_s16 = smov [#allocation6]   ;;  %v26_v1 = vld [vmem:[#allocation3] sm:$0xff]  ;;  %v27_v2 = vld [vmem:[#allocation3 + $0x8] sm:$0xff] }
   0xe   :  { %s39_s17 = sshll.u32 %s95_s16, 4  ;;  %v29_v3 = vmul.f32 %v28_v0, %v26_v1  ;;  %v30_v4 = vmul.f32 %v28_v0, %v27_v2  ;;  %s40_s17 = int_to_ptr.vmem [resolvable:$true] %s39_s17 }
   0xf   :  { %s70_s18 = scalar_lea.vmem %s40_s17, 256  ;;  %p75_p6 = scmp.lt.s32.totalorder %s40_s17, %s40_s17 }
  0x10   :  { %31 = vst [vmem:[#allocation6] sm:$0xff] %v29_v3  ;;  %32 = vst [vmem:[#allocation6 + $0x8] sm:$0xff] %v30_v4  ;;  %p71_p5 = scmp.ne.s32.totalorder %s40_s17, %s70_s18  ;;  %p76_p7 = scmp.lt.s32.totalorder %s70_s18, %s70_s18 }
  0x12   :  { %p77_p8 = por %p76_p7, %p75_p6 }
  0x14   :  { %p78_p9 = pnand %p77_p8, %p71_p5 }
  0x16   :  { %81 = shalt.err (!%p78_p9)
}
  0x17   :  { %42 = dma.vmem_to_hbm [thread:$0]  %s40_s17, 256, %s122_s2, [#allocation5]  }
  0x18   :  { %92 = dma.done.wait [#allocation5], 256  }
  0x19   :  { %93 = vsyncadd [#allocation5], 4294967040 }
  0x1a   :  { %46 = vsyncpa [#allocation4], 1 }
  0x1b   :  { %47 = vsyncpa [#allocation5], 1 }

</bundles_post_ra>
